<compile_context>
chip_gen: v7x
topology: tpu7x:2x2x1
jax: 0.10.0
libtpu: 0.0.40
codegen_flags: <defaults>
</compile_context>

<pallas_src>
import jax
import jax.numpy as jnp
from jax.experimental import pallas as pl
from jax.experimental.pallas import tpu as pltpu

PADDING = 3
KSIZE = 2 * PADDING + 1  # 7


def _spatial_attention_kernel(x_ref, w_ref, o_ref):
    # x_ref: (TB, C, L) VMEM block; w_ref: (2*KSIZE,) f32 in SMEM (avg taps pre-
    # scaled by 1/C); o_ref: (TB, 1, L).
    x = x_ref[...].astype(jnp.float32)              # (TB, C, L)
    tb, _, L = x.shape

    # Channel-wise sum / max (cross-sublane reductions -> XLU).  The mean's 1/C
    # is already folded into w_ref[:KSIZE] by the wrapper.
    s = jnp.sum(x, axis=1)                          # (TB, L)
    m = jnp.max(x, axis=1)                          # (TB, L)

    lane = jax.lax.broadcasted_iota(jnp.int32, (tb, L), 1)

    # 7-tap cross-correlation with zero padding (PyTorch conv1d semantics):
    #   out[l] = sum_k w[0,k]*avg[l+k-3] + w[1,k]*mx[l+k-3]
    # Implemented as circular rolls (XLU) + one boundary mask per tap; two
    # partial accumulators shorten the add dependency chain.
    acc_even = jnp.zeros((tb, L), jnp.float32)
    acc_odd = jnp.zeros((tb, L), jnp.float32)
    for k in range(KSIZE):
        shift = PADDING - k                         # static Python int in {3..-3}
        if shift == 0:
            s_k, m_k = s, m
        else:
            s_k = pltpu.roll(s, shift=shift % L, axis=1)
            m_k = pltpu.roll(m, shift=shift % L, axis=1)
        tap = w_ref[k] * s_k + w_ref[KSIZE + k] * m_k   # SMEM scalar * vector FMAs
        if shift != 0:
            valid = (lane >= shift) & (lane < L + shift)
            tap = jnp.where(valid, tap, 0.0)
        if k % 2 == 0:
            acc_even = acc_even + tap
        else:
            acc_odd = acc_odd + tap

    att = jax.nn.sigmoid(acc_even + acc_odd)        # EUP sigmoid, (TB, L)
    o_ref[...] = att[:, None, :].astype(o_ref.dtype)


def spatial_attention_map(x, w, *, block_batch=None):
    """Pallas kernel: returns the (N, 1, L) spatial-attention map (pre-broadcast)."""
    N, C, L = x.shape
    w = jnp.asarray(w, jnp.float32).reshape(2, KSIZE)
    # Fold the 1/C of torch.mean into the avg-branch taps -> kernel uses the raw
    # channel sum.
    w_flat = jnp.concatenate([w[0] / float(C), w[1]])      # (2*KSIZE,) SMEM scalars

    if block_batch is None:
        # Budget by the f32 working row (covers the input block and its f32
        # cast): double-buffered inputs + temporaries stay <= ~8 MiB, well under
        # the default scoped VMEM on v5e/v6e/v7x.  Tile >= ~2 MiB already sits
        # on the HBM roofline plateau.
        row_f32 = C * L * 4
        tb = max(1, min(N, (2 * 1024 * 1024) // max(row_f32, 1)))
        # Keep >= 4 grid steps for megacore sharding while blocks stay >= 256 KiB.
        quarter = pl.cdiv(N, 4)
        if quarter * row_f32 >= 256 * 1024:
            tb = min(tb, quarter)
    else:
        tb = max(1, min(N, block_batch))

    grid = (pl.cdiv(N, tb),)
    return pl.pallas_call(
        _spatial_attention_kernel,
        out_shape=jax.ShapeDtypeStruct((N, 1, L), x.dtype),
        grid=grid,
        in_specs=[
            pl.BlockSpec((tb, C, L), lambda b: (b, 0, 0)),
            pl.BlockSpec(memory_space=pltpu.MemorySpace.SMEM),
        ],
        out_specs=pl.BlockSpec((tb, 1, L), lambda b: (b, 0, 0)),
        compiler_params=pltpu.CompilerParams(
            dimension_semantics=("parallel",)),
    )(x, w_flat)


def spatial_attention(x, w, *, block_batch=None):
    """Matches the PyTorch module: returns att.expand_as(x), shape (N, C, L)."""
    att = spatial_attention_map(x, w, block_batch=block_batch)
    # expand_as is a view in PyTorch; broadcasting here (fusible under jit) keeps
    # the kernel's HBM writes at N*L instead of N*C*L.
    return jnp.broadcast_to(att, x.shape)


def _reference(x, w):
    """Pure-JAX reference matching the PyTorch forward exactly."""
    avg = jnp.mean(x, axis=1, keepdims=True)            # (N, 1, L)
    mx = jnp.max(x, axis=1, keepdims=True)              # (N, 1, L)
    xt = jnp.concatenate([avg, mx], axis=1)             # (N, 2, L)
    pad = jnp.pad(xt, ((0, 0), (0, 0), (PADDING, PADDING)))
    L = x.shape[2]
    out = jnp.zeros((x.shape[0], 1, L), jnp.float32)
    for c in range(2):
        for k in range(KSIZE):
            out = out + w[c, k] * pad[:, c:c + 1, k:k + L]
    att = jax.nn.sigmoid(out)
    return jnp.broadcast_to(att.astype(x.dtype), x.shape)


if __name__ == "__main__":
    key = jax.random.PRNGKey(0)
    kx, kw, kx2 = jax.random.split(key, 3)

    # Conv1d(in=2, out=1, kernel=7, bias=False) weight: (1, 2, 7) squeezed to (2, 7).
    # Deterministic synthetic init (uniform, Kaiming-style bound), no checkpoint load.
    fan_in = 2 * KSIZE
    bound = 1.0 / (fan_in ** 0.5)
    w = jax.random.uniform(kw, (2, KSIZE), dtype=jnp.float32,
                           minval=-bound, maxval=bound)

    # Test 1: small shape consistent with the module; whole batch in one block.
    N, C, L = 2, 4, 128
    x = jax.random.normal(kx, (N, C, L), dtype=jnp.float32)
    out = jax.block_until_ready(spatial_attention(x, w))
    assert out.shape == x.shape
    assert jnp.allclose(out, _reference(x, w), atol=1e-5, rtol=1e-5), "mismatch (test 1)"

    # Test 2: batch not divisible by the block -> exercises the boundary block path.
    N2, C2, L2 = 3, 6, 256
    x2 = jax.random.normal(kx2, (N2, C2, L2), dtype=jnp.float32)
    out2 = jax.block_until_ready(spatial_attention(x2, w, block_batch=2))
    assert out2.shape == x2.shape
    assert jnp.allclose(out2, _reference(x2, w), atol=1e-5, rtol=1e-5), "mismatch (test 2)"

    print("KERNEL_OK")
</pallas_src>

<mosaic_0001>
module attributes {stable_mosaic.version = 11 : i64} {
  func.func @_spatial_attention_kernel(%arg0: i32, %arg1: memref<2x4x128xf32, #tpu.memory_space<vmem>>, %arg2: memref<14xf32, #tpu.memory_space<smem>>, %arg3: memref<2x1x128xf32, #tpu.memory_space<vmem>>) attributes {dimension_semantics = [#tpu.dimension_semantics<parallel>], iteration_bounds = array<i64: 1>, scalar_prefetch = 0 : i64, scratch_operands = 0 : i64, tpu.core_type = #tpu.core_type<tc>, window_params = [{transform_indices = @transform_0, window_bounds = array<i64: 2, 4, 128>}, {transform_indices = @transform_1, window_bounds = array<i64: 14>}, {transform_indices = @transform_2, window_bounds = array<i64: 2, 1, 128>}]} {
    %c0 = arith.constant 0 : index
    %c0_0 = arith.constant 0 : index
    %c0_1 = arith.constant 0 : index
    %0 = vector.load %arg1[%c0, %c0_0, %c0_1] : memref<2x4x128xf32, #tpu.memory_space<vmem>>, vector<2x4x128xf32>
    %cst = arith.constant dense<0.000000e+00> : vector<2x128xf32>
    %1 = vector.multi_reduction <add>, %0, %cst [1] : vector<2x4x128xf32> to vector<2x128xf32>
    %cst_2 = arith.constant dense<0xFF800000> : vector<2x128xf32>
    %2 = vector.multi_reduction <maximumf>, %0, %cst_2 [1] : vector<2x4x128xf32> to vector<2x128xf32>
    %3 = tpu.iota {dimensions = array<i32: 1>} : vector<2x128xi32>
    %cst_3 = arith.constant 0.000000e+00 : f32
    %4 = vector.broadcast %cst_3 : f32 to vector<2x128xf32>
    %cst_4 = arith.constant 0.000000e+00 : f32
    %5 = vector.broadcast %cst_4 : f32 to vector<2x128xf32>
    %c3_i32 = arith.constant 3 : i32
    %6 = tpu.dynamic_rotate %1 by %c3_i32 dim 1 : vector<2x128xf32>, i32 -> vector<2x128xf32>
    %c3_i32_5 = arith.constant 3 : i32
    %7 = tpu.dynamic_rotate %2 by %c3_i32_5 dim 1 : vector<2x128xf32>, i32 -> vector<2x128xf32>
    %c0_6 = arith.constant 0 : index
    %8 = memref.load %arg2[%c0_6] : memref<14xf32, #tpu.memory_space<smem>>
    %9 = vector.broadcast %8 : f32 to vector<2x128xf32>
    %10 = arith.mulf %9, %6 : vector<2x128xf32>
    %c7 = arith.constant 7 : index
    %11 = memref.load %arg2[%c7] : memref<14xf32, #tpu.memory_space<smem>>
    %12 = vector.broadcast %11 : f32 to vector<2x128xf32>
    %13 = arith.mulf %12, %7 : vector<2x128xf32>
    %14 = arith.addf %10, %13 : vector<2x128xf32>
    %c3_i32_7 = arith.constant 3 : i32
    %15 = vector.broadcast %c3_i32_7 : i32 to vector<2x128xi32>
    %16 = arith.cmpi sge, %3, %15 : vector<2x128xi32>
    %c131_i32 = arith.constant 131 : i32
    %17 = vector.broadcast %c131_i32 : i32 to vector<2x128xi32>
    %18 = arith.cmpi slt, %3, %17 : vector<2x128xi32>
    %19 = arith.andi %16, %18 : vector<2x128xi1>
    %cst_8 = arith.constant 0.000000e+00 : f32
    %20 = vector.broadcast %cst_8 : f32 to vector<2x128xf32>
    %21 = arith.select %19, %14, %20 : vector<2x128xi1>, vector<2x128xf32>
    %22 = arith.addf %4, %21 : vector<2x128xf32>
    %c2_i32 = arith.constant 2 : i32
    %23 = tpu.dynamic_rotate %1 by %c2_i32 dim 1 : vector<2x128xf32>, i32 -> vector<2x128xf32>
    %c2_i32_9 = arith.constant 2 : i32
    %24 = tpu.dynamic_rotate %2 by %c2_i32_9 dim 1 : vector<2x128xf32>, i32 -> vector<2x128xf32>
    %c1 = arith.constant 1 : index
    %25 = memref.load %arg2[%c1] : memref<14xf32, #tpu.memory_space<smem>>
    %26 = vector.broadcast %25 : f32 to vector<2x128xf32>
    %27 = arith.mulf %26, %23 : vector<2x128xf32>
    %c8 = arith.constant 8 : index
    %28 = memref.load %arg2[%c8] : memref<14xf32, #tpu.memory_space<smem>>
    %29 = vector.broadcast %28 : f32 to vector<2x128xf32>
    %30 = arith.mulf %29, %24 : vector<2x128xf32>
    %31 = arith.addf %27, %30 : vector<2x128xf32>
    %c2_i32_10 = arith.constant 2 : i32
    %32 = vector.broadcast %c2_i32_10 : i32 to vector<2x128xi32>
    %33 = arith.cmpi sge, %3, %32 : vector<2x128xi32>
    %c130_i32 = arith.constant 130 : i32
    %34 = vector.broadcast %c130_i32 : i32 to vector<2x128xi32>
    %35 = arith.cmpi slt, %3, %34 : vector<2x128xi32>
    %36 = arith.andi %33, %35 : vector<2x128xi1>
    %cst_11 = arith.constant 0.000000e+00 : f32
    %37 = vector.broadcast %cst_11 : f32 to vector<2x128xf32>
    %38 = arith.select %36, %31, %37 : vector<2x128xi1>, vector<2x128xf32>
    %39 = arith.addf %5, %38 : vector<2x128xf32>
    %c1_i32 = arith.constant 1 : i32
    %40 = tpu.dynamic_rotate %1 by %c1_i32 dim 1 : vector<2x128xf32>, i32 -> vector<2x128xf32>
    %c1_i32_12 = arith.constant 1 : i32
    %41 = tpu.dynamic_rotate %2 by %c1_i32_12 dim 1 : vector<2x128xf32>, i32 -> vector<2x128xf32>
    %c2 = arith.constant 2 : index
    %42 = memref.load %arg2[%c2] : memref<14xf32, #tpu.memory_space<smem>>
    %43 = vector.broadcast %42 : f32 to vector<2x128xf32>
    %44 = arith.mulf %43, %40 : vector<2x128xf32>
    %c9 = arith.constant 9 : index
    %45 = memref.load %arg2[%c9] : memref<14xf32, #tpu.memory_space<smem>>
    %46 = vector.broadcast %45 : f32 to vector<2x128xf32>
    %47 = arith.mulf %46, %41 : vector<2x128xf32>
    %48 = arith.addf %44, %47 : vector<2x128xf32>
    %c1_i32_13 = arith.constant 1 : i32
    %49 = vector.broadcast %c1_i32_13 : i32 to vector<2x128xi32>
    %50 = arith.cmpi sge, %3, %49 : vector<2x128xi32>
    %c129_i32 = arith.constant 129 : i32
    %51 = vector.broadcast %c129_i32 : i32 to vector<2x128xi32>
    %52 = arith.cmpi slt, %3, %51 : vector<2x128xi32>
    %53 = arith.andi %50, %52 : vector<2x128xi1>
    %cst_14 = arith.constant 0.000000e+00 : f32
    %54 = vector.broadcast %cst_14 : f32 to vector<2x128xf32>
    %55 = arith.select %53, %48, %54 : vector<2x128xi1>, vector<2x128xf32>
    %56 = arith.addf %22, %55 : vector<2x128xf32>
    %c3 = arith.constant 3 : index
    %57 = memref.load %arg2[%c3] : memref<14xf32, #tpu.memory_space<smem>>
    %58 = vector.broadcast %57 : f32 to vector<2x128xf32>
    %59 = arith.mulf %58, %1 : vector<2x128xf32>
    %c10 = arith.constant 10 : index
    %60 = memref.load %arg2[%c10] : memref<14xf32, #tpu.memory_space<smem>>
    %61 = vector.broadcast %60 : f32 to vector<2x128xf32>
    %62 = arith.mulf %61, %2 : vector<2x128xf32>
    %63 = arith.addf %59, %62 : vector<2x128xf32>
    %64 = arith.addf %39, %63 : vector<2x128xf32>
    %c127_i32 = arith.constant 127 : i32
    %65 = tpu.dynamic_rotate %1 by %c127_i32 dim 1 : vector<2x128xf32>, i32 -> vector<2x128xf32>
    %c127_i32_15 = arith.constant 127 : i32
    %66 = tpu.dynamic_rotate %2 by %c127_i32_15 dim 1 : vector<2x128xf32>, i32 -> vector<2x128xf32>
    %c4 = arith.constant 4 : index
    %67 = memref.load %arg2[%c4] : memref<14xf32, #tpu.memory_space<smem>>
    %68 = vector.broadcast %67 : f32 to vector<2x128xf32>
    %69 = arith.mulf %68, %65 : vector<2x128xf32>
    %c11 = arith.constant 11 : index
    %70 = memref.load %arg2[%c11] : memref<14xf32, #tpu.memory_space<smem>>
    %71 = vector.broadcast %70 : f32 to vector<2x128xf32>
    %72 = arith.mulf %71, %66 : vector<2x128xf32>
    %73 = arith.addf %69, %72 : vector<2x128xf32>
    %c-1_i32 = arith.constant -1 : i32
    %74 = vector.broadcast %c-1_i32 : i32 to vector<2x128xi32>
    %75 = arith.cmpi sge, %3, %74 : vector<2x128xi32>
    %c127_i32_16 = arith.constant 127 : i32
    %76 = vector.broadcast %c127_i32_16 : i32 to vector<2x128xi32>
    %77 = arith.cmpi slt, %3, %76 : vector<2x128xi32>
    %78 = arith.andi %75, %77 : vector<2x128xi1>
    %cst_17 = arith.constant 0.000000e+00 : f32
    %79 = vector.broadcast %cst_17 : f32 to vector<2x128xf32>
    %80 = arith.select %78, %73, %79 : vector<2x128xi1>, vector<2x128xf32>
    %81 = arith.addf %56, %80 : vector<2x128xf32>
    %c126_i32 = arith.constant 126 : i32
    %82 = tpu.dynamic_rotate %1 by %c126_i32 dim 1 : vector<2x128xf32>, i32 -> vector<2x128xf32>
    %c126_i32_18 = arith.constant 126 : i32
    %83 = tpu.dynamic_rotate %2 by %c126_i32_18 dim 1 : vector<2x128xf32>, i32 -> vector<2x128xf32>
    %c5 = arith.constant 5 : index
    %84 = memref.load %arg2[%c5] : memref<14xf32, #tpu.memory_space<smem>>
    %85 = vector.broadcast %84 : f32 to vector<2x128xf32>
    %86 = arith.mulf %85, %82 : vector<2x128xf32>
    %c12 = arith.constant 12 : index
    %87 = memref.load %arg2[%c12] : memref<14xf32, #tpu.memory_space<smem>>
    %88 = vector.broadcast %87 : f32 to vector<2x128xf32>
    %89 = arith.mulf %88, %83 : vector<2x128xf32>
    %90 = arith.addf %86, %89 : vector<2x128xf32>
    %c-2_i32 = arith.constant -2 : i32
    %91 = vector.broadcast %c-2_i32 : i32 to vector<2x128xi32>
    %92 = arith.cmpi sge, %3, %91 : vector<2x128xi32>
    %c126_i32_19 = arith.constant 126 : i32
    %93 = vector.broadcast %c126_i32_19 : i32 to vector<2x128xi32>
    %94 = arith.cmpi slt, %3, %93 : vector<2x128xi32>
    %95 = arith.andi %92, %94 : vector<2x128xi1>
    %cst_20 = arith.constant 0.000000e+00 : f32
    %96 = vector.broadcast %cst_20 : f32 to vector<2x128xf32>
    %97 = arith.select %95, %90, %96 : vector<2x128xi1>, vector<2x128xf32>
    %98 = arith.addf %64, %97 : vector<2x128xf32>
    %c125_i32 = arith.constant 125 : i32
    %99 = tpu.dynamic_rotate %1 by %c125_i32 dim 1 : vector<2x128xf32>, i32 -> vector<2x128xf32>
    %c125_i32_21 = arith.constant 125 : i32
    %100 = tpu.dynamic_rotate %2 by %c125_i32_21 dim 1 : vector<2x128xf32>, i32 -> vector<2x128xf32>
    %c6 = arith.constant 6 : index
    %101 = memref.load %arg2[%c6] : memref<14xf32, #tpu.memory_space<smem>>
    %102 = vector.broadcast %101 : f32 to vector<2x128xf32>
    %103 = arith.mulf %102, %99 : vector<2x128xf32>
    %c13 = arith.constant 13 : index
    %104 = memref.load %arg2[%c13] : memref<14xf32, #tpu.memory_space<smem>>
    %105 = vector.broadcast %104 : f32 to vector<2x128xf32>
    %106 = arith.mulf %105, %100 : vector<2x128xf32>
    %107 = arith.addf %103, %106 : vector<2x128xf32>
    %c-3_i32 = arith.constant -3 : i32
    %108 = vector.broadcast %c-3_i32 : i32 to vector<2x128xi32>
    %109 = arith.cmpi sge, %3, %108 : vector<2x128xi32>
    %c125_i32_22 = arith.constant 125 : i32
    %110 = vector.broadcast %c125_i32_22 : i32 to vector<2x128xi32>
    %111 = arith.cmpi slt, %3, %110 : vector<2x128xi32>
    %112 = arith.andi %109, %111 : vector<2x128xi1>
    %cst_23 = arith.constant 0.000000e+00 : f32
    %113 = vector.broadcast %cst_23 : f32 to vector<2x128xf32>
    %114 = arith.select %112, %107, %113 : vector<2x128xi1>, vector<2x128xf32>
    %115 = arith.addf %81, %114 : vector<2x128xf32>
    %116 = arith.addf %115, %98 : vector<2x128xf32>
    %117 = arith.negf %116 : vector<2x128xf32>
    %118 = math.exp %117 : vector<2x128xf32>
    %cst_24 = arith.constant 1.000000e+00 : f32
    %119 = vector.broadcast %cst_24 : f32 to vector<2x128xf32>
    %120 = arith.addf %119, %118 : vector<2x128xf32>
    %121 = arith.divf %119, %120 : vector<2x128xf32>
    %122 = vector.shape_cast %121 : vector<2x128xf32> to vector<2x1x128xf32>
    %c0_25 = arith.constant 0 : index
    %c0_26 = arith.constant 0 : index
    %c0_27 = arith.constant 0 : index
    %123 = vector.load %arg3[%c0_25, %c0_26, %c0_27] : memref<2x1x128xf32, #tpu.memory_space<vmem>>, vector<2x1x128xf32>
    tpu.vector_store %arg3[%c0_25, %c0_26, %c0_27], %122 {strides = array<i32>} : memref<2x1x128xf32, #tpu.memory_space<vmem>>, vector<2x1x128xf32>,
    return
  }
  func.func @transform_0(%arg0: i32) -> (i32, i32, i32) {
    %c0_i32 = arith.constant 0 : i32
    %c0_i32_0 = arith.constant 0 : i32
    %c0_i32_1 = arith.constant 0 : i32
    return %arg0, %c0_i32, %c0_i32_0 : i32, i32, i32
  }
  func.func @transform_1(%arg0: i32) -> i32 {
    %c0_i32 = arith.constant 0 : i32
    %c0_i32_0 = arith.constant 0 : i32
    return %c0_i32 : i32
  }
  func.func @transform_2(%arg0: i32) -> (i32, i32, i32) {
    %c0_i32 = arith.constant 0 : i32
    %c0_i32_0 = arith.constant 0 : i32
    %c0_i32_1 = arith.constant 0 : i32
    return %arg0, %c0_i32, %c0_i32_0 : i32, i32, i32
  }
}

</mosaic_0001>

<bundles_post_ra>
// kernel: tpu_custom_call.1
= control target key start
LH: loop header
LB: loop body
LE: loop exit
PB: predicated region body
PF: predicated region fallthrough
CT: control target
= control target key end

     0   :  { %7 = vsyncpa [#allocation3], 0  ;;  %s417_s0 = inlined_call_operand.hbm [shape: f32[2,4,128], index: 0, kind: input, shape index: {}]   ;;  %s418_s1 = inlined_call_operand.vmem [shape: f32[14], index: 1, kind: input, shape index: {}]   ;;  %s419_s2 = inlined_call_operand.hbm [shape: f32[2,1,128], index: 2, kind: output, shape index: {}]  }
   0x1   :  { %8 = vsyncpa [#allocation5], 0 }
   0x2   :  { %9 = vsyncpa [#allocation4], 0  ;;  %s339_s9 = smov [#allocation2]   ;;  %s28_s13 = sshll.u32 %s418_s1, 4  ;;  %s29_s13 = int_to_ptr.vmem [resolvable:$true] %s28_s13 }
   0x3   :  { %s15_s10 = sshll.u32 %s339_s9, 4  ;;  %s277_s16 = scalar_lea.hbm %s417_s0, 128  ;;  %s16_s10 = int_to_ptr.vmem [resolvable:$true] %s15_s10 }
   0x4   :  { %p278_p0 = scmp.ne.s32.totalorder %s417_s0, %s277_s16  ;;  %p281_p1 = scmp.lt.u32.totalorder %s277_s16, %s417_s0 }
   0x6   :  { %p283_p2 = pnand %p281_p1, %p278_p0 }
   0x8   :  { %286 = shalt.err (!%p283_p2)
}
   0x9   :  { %s287_s21 = scalar_lea.vmem %s16_s10, 128  ;;  %p292_p4 = scmp.lt.s32.totalorder %s16_s10, %s16_s10 }
   0xa   :  { %p288_p3 = scmp.ne.s32.totalorder %s16_s10, %s287_s21  ;;  %p293_p5 = scmp.lt.s32.totalorder %s287_s21, %s287_s21 }
   0xc   :  { %p294_p6 = por %p293_p5, %p292_p4 }
   0xe   :  { %p295_p7 = pnand %p294_p6, %p288_p3 }
  0x10   :  { %298 = shalt.err (!%p295_p7)
}
  0x11   :  { %s340_s1 = smov 64   ;;  %s341_s22 = smov 4  }
  0x12   :  { %21 = dma.hbm_to_vmem [thread:$0]  %s417_s0, 128, %s16_s10, [#allocation3], %s340_s1, %s340_s1, %s341_s22  }
  0x13   :  { %s299_s25 = scalar_lea.vmem %s29_s13, 16  ;;  %p304_p9 = scmp.lt.s32.totalorder %s29_s13, %s29_s13 }
  0x14   :  { %p300_p8 = scmp.ne.s32.totalorder %s29_s13, %s299_s25  ;;  %p305_p10 = scmp.lt.s32.totalorder %s299_s25, %s299_s25 }
  0x16   :  { %p306_p11 = por %p305_p10, %p304_p9 }
  0x18   :  { %p307_p12 = pnand %p306_p11, %p300_p8 }
  0x1a   :  { %310 = shalt.err (!%p307_p12)
}
  0x1b   :  { %s342_s26 = smov [#allocation6]  }
  0x1c   :  { %31 = dma.vmem_to_smem %s29_s13, 16, %s342_s26, [#allocation5]  }
  0x1d   :  { %333 = dma.done.wait [#allocation3], 128  }
  0x1e   :  { %334 = vsyncadd [#allocation3], 4294967168 }
  0x1f   :  { %335 = dma.done.wait [#allocation5], 16  }
  0x20   :  { %336 = vsyncadd [#allocation5], 4294967280 }
  0x21   :  { %38 = sfence }
  0x22   :  { %v39_v0 = vld [vmem:[#allocation2] sm:$0xf]  ;;  %v40_v1 = vld [vmem:[#allocation2 + $0x4] sm:$0xf]  ;;  %vm41_vm0 = vcmask 1043456   ;;  %s249_s0 = sld [smem:[#allocation6 + $0x3]]  ;;  %v70_v45 = vlaneseq }
  0x23   :  { %v42_v2 = vsel %vm41_vm0, %v39_v0, 0.0  ;;  %v49_v3 = vsel %vm41_vm0, %v40_v1, 0.0  ;;  %v56_v4 = vsel %vm41_vm0, %v39_v0, -inf  ;;  %v63_v5 = vsel %vm41_vm0, %v40_v1, -inf  ;;  %s250_s27 = sld [smem:[#allocation6 + $0xa]]  ;;  %s343_s28 = smov 1  }
  0x24   :  { %v43_v6 = vrot.slane %v42_v2, 4  ;;  %v50_v7 = vrot.slane %v49_v3, 4  ;;  %v57_v8 = vrot.slane %v56_v4, 4  ;;  %v64_v9 = vrot.slane %v63_v5, 4  ;;  %s344_s29 = smov 3   ;;  %s345_s30 = smov 2  }
  0x25   :  { %vm74_vm1 = vcmask 1041409   ;;  %s346_s3 = smov 127   ;;  %s347_s4 = smov 126   ;;  %v71_v60 = vand.u32 127, %v70_v45 }
  0x26   :  { %v44_v10 = vadd.f32 %v43_v6, %v42_v2  ;;  %v51_v11 = vadd.f32 %v50_v7, %v49_v3  ;;  %v58_v12 = vmax.f32 %v56_v4, %v57_v8  ;;  %v65_v13 = vmax.f32 %v63_v5, %v64_v9  ;;  %s348_s5 = smov 125   ;;  %s247_s6 = sld [smem:[#allocation6 + $0x2]] }
  0x27   :  { %s85_s7 = sld [smem:[#allocation6]]  ;;  %s248_s8 = sld [smem:[#allocation6 + $0x9]]  ;;  %vm124_vm2 = vcmp.ge.s32.totalorder %v71_v60, 1  ;;  %vm92_vm3 = vcmp.ge.s32.totalorder %v71_v60, 3  ;;  %vm108_vm4 = vcmp.ge.s32.totalorder %v71_v60, 2  ;;  %vm156_vm5 = vcmp.lt.s32.totalorder %v71_v60, 127 }
  0x28   :  { %v45_v14 = vrot.slane %v44_v10, 2  ;;  %v52_v15 = vrot.slane %v51_v11, 2  ;;  %v59_v16 = vrot.slane %v58_v12, 2  ;;  %v66_v17 = vrot.slane %v65_v13, 2  ;;  %s244_s9 = sld [smem:[#allocation6 + $0x7]]  ;;  %s246_s10 = sld [smem:[#allocation6 + $0x8]] }
  0x29   :  { %v130_v30 = vstv %s249_s0  ;;  %v134_v34 = vstv %s250_s27  ;;  %s245_s11 = sld [smem:[#allocation6 + $0x1]]  ;;  %s252_s12 = sld [smem:[#allocation6 + $0xb]]  ;;  %vm172_vm6 = vcmp.lt.s32.totalorder %v71_v60, 126  ;;  %vm188_vm7 = vcmp.lt.s32.totalorder %v71_v60, 125 }
  0x2a   :  { %v46_v18 = vadd.f32 %v45_v14, %v44_v10  ;;  %v53_v19 = vadd.f32 %v52_v15, %v51_v11  ;;  %v60_v20 = vmax.f32 %v58_v12, %v59_v16  ;;  %v67_v21 = vmax.f32 %v65_v13, %v66_v17  ;;  %s251_s13 = sld [smem:[#allocation6 + $0x4]]  ;;  %s391_s15 = sld [smem:[#allocation6 + $0x5]] }
  0x2b   :  { %s389_s14 = sld [smem:[#allocation6 + $0xc]]  ;;  %s393_s16 = sld [smem:[#allocation6 + $0xd]] }
  0x2c   :  { %v47_v22 = vrot.slane %v46_v18, 1  ;;  %v54_v23 = vrot.slane %v53_v19, 1  ;;  %v61_v24 = vrot.slane %v60_v20, 1  ;;  %v68_v25 = vrot.slane %v67_v21, 1  ;;  %s395_s17 = sld [smem:[#allocation6 + $0x6]]  ;;  %s350_s18 = smov [#allocation7]  }
  0x2d   :  { %v121_v46 = vstv %s248_s8  ;;  %v118_v50 = vstv %s247_s6  ;;  %v86_v51 = vstv %s85_s7  ;;  %s231_s19 = sshll.u32 %s350_s18, 4  ;;  %s232_s19 = int_to_ptr.vmem [resolvable:$true] %s231_s19 }
  0x2e   :  { %v48_v26 = vadd.f32 %v47_v22, %v46_v18  ;;  %v55_v27 = vadd.f32 %v54_v23, %v53_v19  ;;  %v62_v28 = vmax.f32 %v60_v20, %v61_v24  ;;  %v69_v29 = vmax.f32 %v67_v21, %v68_v25  ;;  %s311_s20 = scalar_lea.vmem %s232_s19, 32  ;;  %p316_p0 = scmp.lt.s32.totalorder %s232_s19, %s232_s19 }
  0x2f   :  { %v89_v47 = vstv %s244_s9  ;;  %v105_v52 = vstv %s246_s10  ;;  %v102_v53 = vstv %s245_s11  ;;  %v152_v54 = vstv %s252_s12  ;;  %p312_p13 = scmp.ne.s32.totalorder %s232_s19, %s311_s20  ;;  %p317_p1 = scmp.lt.s32.totalorder %s311_s20, %s311_s20 }
  0x30   :  { %v75_v31 = vsel %vm74_vm1, %v55_v27, %v48_v26  ;;  %v131_v32 = vmul.f32 %v130_v30, %v48_v26  ;;  %v132_v33 = vmul.f32 %v130_v30, %v55_v27  ;;  %v81_v35 = vsel %vm74_vm1, %v69_v29, %v62_v28 }
  0x31   :  { %113 = vrot.lane.b32.xlu1 %v75_v31, %s343_s28  ;;  %77 = vrot.lane.b32.xlu0 %v75_v31, %s344_s29  ;;  %v135_v36 = vmul.f32 %v134_v34, %v62_v28  ;;  %v136_v37 = vmul.f32 %v134_v34, %v69_v29  ;;  %v149_v55 = vstv %s251_s13  ;;  %v168_v3 = vstv %s389_s14  ;;  %p318_p2 = por %p317_p1, %p316_p0 }
  0x32   :  { %v165_v4 = vstv %s391_s15  ;;  %v184_v13 = vstv %s393_s16  ;;  %v181_v14 = vstv %s395_s17 }
  0x33   :  { %v137_v38 = vadd.f32 %v135_v36, %v131_v32  ;;  %v138_v39 = vadd.f32 %v136_v37, %v132_v33  ;;  %v349_v36 = vmov 1966171168   ;;  %p319_p3 = pnand %p318_p2, %p312_p13 }
  0x34   :  { %v201_v37 = vunpack.c.l.s4 %v349_v36 }
  0x35   :  { %115 = vrot.lane.b32.xlu1 %v81_v35, %s343_s28  ;;  %83 = vrot.lane.b32.xlu0 %v81_v35, %s344_s29  ;;  %v387_v40 = vsel %vm74_vm1, %v138_v39, %v137_v38  ;;  %v204_v39 = vshrl.u32 %v70_v45, 7 }
  0x36   :  { %v202_v38 = vunpack.c.0.s8 %v201_v37 }
  0x39   :  { %99 = vrot.lane.b32.xlu1 %v81_v35, %s345_s30  ;;  %97 = vrot.lane.b32.xlu0 %v75_v31, %s345_s30 }
  0x3d   :  { %146 = vrot.lane.b32.xlu1 %v81_v35, %s346_s3  ;;  %144 = vrot.lane.b32.xlu0 %v75_v31, %s346_s3 }
  0x41   :  { %162 = vrot.lane.b32.xlu1 %v81_v35, %s347_s4  ;;  %160 = vrot.lane.b32.xlu0 %v75_v31, %s347_s4 }
  0x45   :  { %178 = vrot.lane.b32.xlu1 %v81_v35, %s348_s5  ;;  %176 = vrot.lane.b32.xlu0 %v75_v31, %s348_s5 }
  0xa3   :  { %v114_v41 = vpop.permute.xlu1 %113  ;;  %v78_v42 = vpop.permute.xlu0 %77 }
  0xa4   :  { %v119_v58 = vmul.f32 %v118_v50, %v114_v41  ;;  %v87_v59 = vmul.f32 %v86_v51, %v78_v42  ;;  %v205_v41 = vsub.s32 %v202_v38, %v204_v39 }
  0xa7   :  { %v116_v43 = vpop.permute.xlu1 %115  ;;  %v84_v44 = vpop.permute.xlu0 %83 }
  0xa8   :  { %v122_v56 = vmul.f32 %v121_v46, %v116_v43  ;;  %v90_v57 = vmul.f32 %v89_v47, %v84_v44 }
  0xaa   :  { %v123_v5 = vadd.f32 %v122_v56, %v119_v58  ;;  %v91_v6 = vadd.f32 %v90_v57, %v87_v59 }
  0xab   :  { %v100_v48 = vpop.permute.xlu1 %99  ;;  %v98_v49 = vpop.permute.xlu0 %97 }
  0xac   :  { %v106_v63 = vmul.f32 %v105_v52, %v100_v48  ;;  %v103_v0 = vmul.f32 %v102_v53, %v98_v49  ;;  %v127_v15 = vsel %vm124_vm2, %v123_v5, 0.0  ;;  %v95_v16 = vsel %vm92_vm3, %v91_v6, 0.0 }
  0xad   :  { %v128_v24 = vadd.f32 %v127_v15, %v95_v16 }
  0xae   :  { %v107_v9 = vadd.f32 %v106_v63, %v103_v0 }
  0xaf   :  { %v147_v61 = vpop.permute.xlu1 %146  ;;  %v145_v62 = vpop.permute.xlu0 %144 }
  0xb0   :  { %v153_v1 = vmul.f32 %v152_v54, %v147_v61  ;;  %v150_v2 = vmul.f32 %v149_v55, %v145_v62  ;;  %v111_v20 = vsel %vm108_vm4, %v107_v9, 0.0 }
  0xb1   :  { %v143_v27 = vadd.f32 %v387_v40, %v111_v20 }
  0xb2   :  { %v154_v10 = vadd.f32 %v153_v1, %v150_v2 }
  0xb3   :  { %v163_v7 = vpop.permute.xlu1 %162  ;;  %v161_v8 = vpop.permute.xlu0 %160 }
  0xb4   :  { %v169_v11 = vmul.f32 %v168_v3, %v163_v7  ;;  %v166_v12 = vmul.f32 %v165_v4, %v161_v8  ;;  %v158_v21 = vsel %vm156_vm5, %v154_v10, 0.0 }
  0xb5   :  { %v159_v28 = vadd.f32 %v158_v21, %v128_v24 }
  0xb6   :  { %v170_v17 = vadd.f32 %v169_v11, %v166_v12 }
  0xb7   :  { %v179_v18 = vpop.permute.xlu1 %178  ;;  %v177_v19 = vpop.permute.xlu0 %176 }
  0xb8   :  { %v185_v22 = vmul.f32 %v184_v13, %v179_v18  ;;  %v182_v23 = vmul.f32 %v181_v14, %v177_v19  ;;  %v174_v25 = vsel %vm172_vm6, %v170_v17, 0.0 }
  0xb9   :  { %v175_v30 = vadd.f32 %v174_v25, %v143_v27 }
  0xba   :  { %v186_v26 = vadd.f32 %v185_v22, %v182_v23 }
  0xbc   :  { %v190_v29 = vsel %vm188_vm7, %v186_v26, 0.0 }
  0xbd   :  { %v191_v31 = vadd.f32 %v190_v29, %v159_v28 }
  0xbf   :  { %v192_v32 = vadd.f32 %v191_v31, %v175_v30 }
  0xc1   :  { %v257_v33 = vmul.f32 -1.442695, %v192_v32 }
  0xc3   :  { %273 = vpow2.f32 %v257_v33 }
  0xcd   :  { %v274_v34 = vpop.eup %273 }
  0xce   :  { %v196_v35 = vadd.f32 1.0, %v274_v34 }
  0xd0   :  { %275 = vrcp.f32 %v196_v35 }
  0xda   :  { %v276_v42 = vpop.eup %275 }
  0xdb   :  { %v206_v40 = vrot.slane %v276_v42, %v205_v41 }
  0xdd   :  { %v207_v43 = vcombine.high %v206_v40, %v206_v40  ;;  %258 = vst.sshfl [vmem:[#allocation7] sm:$0x1 pattern:$0x73625140] %v206_v40 }
  0xdf   :  { %259 = vst.sshfl [vmem:[#allocation7 + $0x1] sm:$0x1 pattern:$0x73625140] %v207_v43 }
  0xe0   :  { %322 = shalt.err (!%p319_p3)
}
  0xe1   :  { %s323_s22 = scalar_lea.hbm %s419_s2, 32 }
  0xe2   :  { %p324_p4 = scmp.ne.s32.totalorder %s419_s2, %s323_s22  ;;  %p327_p5 = scmp.lt.u32.totalorder %s323_s22, %s419_s2 }
  0xe4   :  { %p329_p6 = pnand %p327_p5, %p324_p4 }
  0xe6   :  { %332 = shalt.err (!%p329_p6)
}
  0xe7   :  { %s351_s0 = smov 16  }
  0xe8   :  { %237 = dma.vmem_to_hbm [thread:$0]  %s232_s19, 32, %s419_s2, [#allocation4], %s351_s0, %s351_s0, %s343_s28  }
  0xe9   :  { %337 = dma.done.wait [#allocation4], 32  }
  0xea   :  { %338 = vsyncadd [#allocation4], 4294967264 }
  0xeb   :  { %241 = vsyncpa [#allocation3], 1 }
  0xec   :  { %242 = vsyncpa [#allocation4], 1 }
  0xed   :  { %243 = vsyncpa [#allocation5], 1 }

</bundles_post_ra>
